<compile_context>
chip_gen: v6e
topology: v6e:2x2x1
jax: 0.10.0
libtpu: 0.0.40
codegen_flags: <defaults>
</compile_context>

<pallas_src>
import functools

import jax
import jax.numpy as jnp
from jax.experimental import pallas as pl
from jax.experimental.pallas import tpu as pltpu


EPS = 0.001
ALPHA_0 = 1.0
_SCALE = ALPHA_0 * (1.0 - EPS)          # alpha_t = ALPHA_0 - _SCALE * t

_LANE = 128
_MAX_SLAB_COLS = 8192                   # widest lane-dense column width to try
_AUTO_PALLAS_ELEMENTS = 1 << 22         # auto-use Pallas only for >=4M elements
_MIN_TILE_BYTES = 1 << 20               # ~roofline plateau; prefer more steps above this


def _loglinear_kernel(t_ref, alpha_ref):
    # Exactly one VPU multiply + one subtract per vreg; kernel stays DMA-bound.
    # Arithmetic stays in the input dtype (no widening of the HBM-facing dtype).
    alpha_ref[...] = (ALPHA_0 - _SCALE * t_ref[...]).astype(alpha_ref.dtype)


def _sublane_multiple(dtype):
    bits = jnp.dtype(dtype).itemsize * 8
    if bits >= 32:
        return 8
    if bits == 16:
        return 16
    return 32


@functools.lru_cache(maxsize=1)
def _tpu_config():
    """Best-effort (vmem_capacity_bytes, num_tensorcores) for the local chip."""
    vmem_cap = 128 << 20
    num_tc = 1
    try:
        info = pltpu.get_tpu_info()
        cap = getattr(info, "vmem_capacity_bytes", None)
        if cap:
            vmem_cap = int(cap)
    except Exception:
        pass
    try:
        kind = jax.devices()[0].device_kind.lower()
        if "7" in kind:
            num_tc = 2
    except Exception:
        pass
    if vmem_cap <= (64 << 20):
        # Small-VMEM generations (v7x) are also the 2-TC ones.
        num_tc = max(num_tc, 2)
    return vmem_cap, num_tc


def _pick_slab(n):
    """Lane-dense 2D (rows, cols): widest multiple of 128 (<= 8192) dividing n."""
    if n % _LANE != 0:
        return None
    c = (min(_MAX_SLAB_COLS, n) // _LANE) * _LANE
    while c >= _LANE:
        if n % c == 0:
            return n // c, c
        c -= _LANE
    return None


def _pick_block_rows(R, C, itemsize, sub, vmem_cap, num_tc):
    bytes_per_row = C * itemsize
    small_vmem = vmem_cap <= (64 << 20)
    target_tile_bytes = (6 << 20) if small_vmem else (12 << 20)
    min_steps = 4 * num_tc  # >=4 steps per TensorCore when R permits

    rows_target = max(sub, (target_tile_bytes // bytes_per_row) // sub * sub)
    rows_floor = max(sub, (_MIN_TILE_BYTES // bytes_per_row) // sub * sub)
    rows_for_steps = max(sub, (R // min_steps) // sub * sub)

    block_rows = min(rows_target, R)
    # Prefer more grid steps over bigger tiles once tiles are >= ~1 MiB:
    # extra steps buy DMA overlap for free at the roofline plateau.
    if rows_for_steps >= rows_floor:
        block_rows = min(block_rows, rows_for_steps)
    block_rows = max(1, min(block_rows, R))
    if block_rows < R:
        block_rows = max(sub, (block_rows // sub) * sub)  # keep (8,128) divisibility

    # On 2-TC chips, nudge small odd grids to an even step count so neither
    # TensorCore idles for a full tile.
    if num_tc >= 2 and block_rows < R:
        steps = pl.cdiv(R, block_rows)
        if steps % 2 == 1 and steps < 64:
            cand = pl.cdiv(R, steps + 1)
            cand = max(sub, pl.cdiv(cand, sub) * sub)  # round up to sublane multiple
            if cand < R and pl.cdiv(R, cand) % 2 == 0:
                block_rows = cand

    return block_rows


def loglinear_forward(t, *, use_pallas=None, donate_t=False):
    """Returns (dalpha_t, alpha_t) matching PyTorch LogLinear.forward.

    use_pallas: None -> auto (plain fused XLA unless the tensor is very large),
                True -> force the Pallas streaming kernel,
                False -> never use Pallas.
    donate_t:   alias the output onto t's HBM buffer (only if t is not reused).
    """
    # dalpha_t is a shape-independent scalar constant (d alpha_t / d t).
    dalpha_t = jnp.asarray(-ALPHA_0 * (1.0 - EPS), dtype=t.dtype)

    n = t.size
    slab = _pick_slab(n)
    want_pallas = use_pallas if use_pallas is not None else (n >= _AUTO_PALLAS_ELEMENTS)
    if not want_pallas or slab is None:
        # Fused-XLA path: the op fuses into neighboring producers/consumers,
        # often eliminating the HBM round trip entirely.
        alpha_t = (ALPHA_0 - _SCALE * t).astype(t.dtype)
        return dalpha_t, alpha_t

    R, C = slab
    t2 = t.reshape(R, C)

    sub = _sublane_multiple(t.dtype)
    itemsize = jnp.dtype(t.dtype).itemsize
    vmem_cap, num_tc = _tpu_config()

    block_rows = _pick_block_rows(R, C, itemsize, sub, vmem_cap, num_tc)
    grid = (pl.cdiv(R, block_rows),)

    # Footprint: in + out, double-buffered ~= 4x tile.  Scoped limit leaves
    # headroom but never exceeds 75% of the chip's physical VMEM.
    footprint = 4 * block_rows * C * itemsize
    vmem_limit = max(footprint + (2 << 20), 32 << 20)
    vmem_limit = min(vmem_limit, int(vmem_cap * 0.75))

    alpha2 = pl.pallas_call(
        _loglinear_kernel,
        out_shape=jax.ShapeDtypeStruct((R, C), t.dtype),
        grid=grid,
        in_specs=[pl.BlockSpec((block_rows, C), lambda i: (i, 0))],
        out_specs=pl.BlockSpec((block_rows, C), lambda i: (i, 0)),
        compiler_params=pltpu.CompilerParams(
            dimension_semantics=("parallel",),
            vmem_limit_bytes=vmem_limit,
        ),
        input_output_aliases=({0: 0} if donate_t else {}),
    )(t2)

    return dalpha_t, alpha2.reshape(t.shape)


if __name__ == "__main__":
    key = jax.random.PRNGKey(0)
    k1, k2 = jax.random.split(key)

    # Case 1: tiny timestep tensor -> default fused-XLA path (no pallas_call).
    t_small = jax.random.uniform(k1, (2, 16), dtype=jnp.float32)
    d_s, a_s = loglinear_forward(t_small)

    # Case 2: lane-dense tensor -> forced Pallas streaming path.
    t_pallas = jax.random.uniform(k2, (128, 256), dtype=jnp.float32)
    d_p, a_p = loglinear_forward(t_pallas, use_pallas=True)

    jax.block_until_ready((d_s, a_s, d_p, a_p))

    # Reference check against plain JAX.
    for t, a, d in ((t_small, a_s, d_s), (t_pallas, a_p, d_p)):
        a_ref = ALPHA_0 * (1.0 - (1.0 - EPS) * t)
        assert a.shape == t.shape, "alpha_t shape mismatch"
        assert jnp.allclose(a, a_ref, atol=1e-6), "alpha_t mismatch"
        assert jnp.allclose(d, -ALPHA_0 * (1.0 - EPS), atol=1e-6), "dalpha_t mismatch"

    print("KERNEL_OK")
</pallas_src>

<mosaic_0001>
module attributes {stable_mosaic.version = 11 : i64} {
  func.func @_loglinear_kernel(%arg0: i32, %arg1: memref<4x8192xf32, #tpu.memory_space<vmem>>, %arg2: memref<4x8192xf32, #tpu.memory_space<vmem>>) attributes {dimension_semantics = [#tpu.dimension_semantics<parallel>], iteration_bounds = array<i64: 1>, scalar_prefetch = 0 : i64, scratch_operands = 0 : i64, tpu.core_type = #tpu.core_type<tc>, window_params = [{transform_indices = @transform_0, window_bounds = array<i64: 4, 8192>}, {transform_indices = @transform_1, window_bounds = array<i64: 4, 8192>}]} {
    %c0 = arith.constant 0 : index
    %c0_0 = arith.constant 0 : index
    %0 = vector.load %arg1[%c0, %c0_0] : memref<4x8192xf32, #tpu.memory_space<vmem>>, vector<4x8192xf32>
    %cst = arith.constant 9.990000e-01 : f32
    %1 = vector.broadcast %cst : f32 to vector<4x8192xf32>
    %2 = arith.mulf %1, %0 : vector<4x8192xf32>
    %cst_1 = arith.constant 1.000000e+00 : f32
    %3 = vector.broadcast %cst_1 : f32 to vector<4x8192xf32>
    %4 = arith.subf %3, %2 : vector<4x8192xf32>
    %c0_2 = arith.constant 0 : index
    %c0_3 = arith.constant 0 : index
    %5 = vector.load %arg2[%c0_2, %c0_3] : memref<4x8192xf32, #tpu.memory_space<vmem>>, vector<4x8192xf32>
    tpu.vector_store %arg2[%c0_2, %c0_3], %4 {strides = array<i32>} : memref<4x8192xf32, #tpu.memory_space<vmem>>, vector<4x8192xf32>,
    return
  }
  func.func @transform_0(%arg0: i32) -> (i32, i32) {
    %c0_i32 = arith.constant 0 : i32
    %c0_i32_0 = arith.constant 0 : i32
    return %arg0, %c0_i32 : i32, i32
  }
  func.func @transform_1(%arg0: i32) -> (i32, i32) {
    %c0_i32 = arith.constant 0 : i32
    %c0_i32_0 = arith.constant 0 : i32
    return %arg0, %c0_i32 : i32, i32
  }
}

</mosaic_0001>

<bundles_post_ra>
// kernel: tpu_custom_call.1
= control target key start
LH: loop header
LB: loop body
LE: loop exit
PB: predicated region body
PF: predicated region fallthrough
CT: control target
= control target key end

     0   :  { %6 = vsyncpa [#allocation3], 0  ;;  %s228_s0 = inlined_call_operand.hbm [shape: f32[4,8192], index: 0, kind: input, shape index: {}]   ;;  %s229_s1 = inlined_call_operand.hbm [shape: f32[4,8192], index: 1, kind: output, shape index: {}]  }
   0x1   :  { %7 = vsyncpa [#allocation4], 0  ;;  %s210_s6 = smov [#allocation2]  }
   0x2   :  { %s14_s7 = sshll.u32 %s210_s6, 4  ;;  %s15_s7 = int_to_ptr.vmem [resolvable:$true] %s14_s7 }
   0x3   :  { %s174_s8 = scalar_lea.vmem %s15_s7, 4096  ;;  %p179_p1 = scmp.lt.s32.totalorder %s15_s7, %s15_s7 }
   0x4   :  { %p175_p0 = scmp.ne.s32.totalorder %s15_s7, %s174_s8  ;;  %p180_p2 = scmp.lt.s32.totalorder %s174_s8, %s174_s8 }
   0x6   :  { %p181_p3 = por %p180_p2, %p179_p1 }
   0x8   :  { %p182_p4 = pnand %p181_p3, %p175_p0 }
   0xa   :  { %185 = shalt.err (!%p182_p4)
}
   0xb   :  { %17 = dma.hbm_to_vmem [thread:$0]  %s228_s0, 4096, %s15_s7, [#allocation3]  }
   0xc   :  { %206 = dma.done.wait [#allocation3], 4096  }
   0xd   :  { %207 = vsyncadd [#allocation3], 4294963200  ;;  %v21_v0 = vld [vmem:[#allocation2] sm:$0xff]  ;;  %v22_v1 = vld [vmem:[#allocation2 + $0x8] sm:$0xff]  ;;  %s211_s0 = smov [#allocation5]  }
   0xe   :  { %v23_v2 = vld [vmem:[#allocation2 + $0x10] sm:$0xff]  ;;  %v53_v3 = vmul.f32 0.999, %v21_v0  ;;  %v54_v4 = vmul.f32 0.999, %v22_v1  ;;  %v24_v6 = vld [vmem:[#allocation2 + $0x18] sm:$0xff] }
   0xf   :  { %v55_v5 = vmul.f32 0.999, %v23_v2  ;;  %v25_v7 = vld [vmem:[#allocation2 + $0x20] sm:$0xff]  ;;  %v26_v8 = vld [vmem:[#allocation2 + $0x28] sm:$0xff]  ;;  %v56_v12 = vmul.f32 0.999, %v24_v6 }
  0x10   :  { %v85_v9 = vsub.f32 1.0, %v53_v3  ;;  %v86_v10 = vsub.f32 1.0, %v54_v4  ;;  %v27_v13 = vld [vmem:[#allocation2 + $0x30] sm:$0xff]  ;;  %v57_v14 = vmul.f32 0.999, %v25_v7  ;;  %v28_v18 = vld [vmem:[#allocation2 + $0x38] sm:$0xff] }
  0x11   :  { %v87_v11 = vsub.f32 1.0, %v55_v5  ;;  %v58_v15 = vmul.f32 0.999, %v26_v8  ;;  %v59_v16 = vmul.f32 0.999, %v27_v13  ;;  %v88_v17 = vsub.f32 1.0, %v56_v12 }
  0x12   :  { %117 = vst [vmem:[#allocation5] sm:$0xff] %v85_v9  ;;  %118 = vst [vmem:[#allocation5 + $0x8] sm:$0xff] %v86_v10  ;;  %v29_v19 = vld [vmem:[#allocation2 + $0x40] sm:$0xff]  ;;  %v30_v20 = vld [vmem:[#allocation2 + $0x48] sm:$0xff]  ;;  %v89_v21 = vsub.f32 1.0, %v57_v14  ;;  %s155_s11 = sshll.u32 %s211_s0, 4  ;;  %s156_s11 = int_to_ptr.vmem [resolvable:$true] %s155_s11 }
  0x13   :  { %119 = vst [vmem:[#allocation5 + $0x10] sm:$0xff] %v87_v11  ;;  %v90_v22 = vsub.f32 1.0, %v58_v15  ;;  %v91_v23 = vsub.f32 1.0, %v59_v16  ;;  %v60_v24 = vmul.f32 0.999, %v28_v18  ;;  %v31_v25 = vld [vmem:[#allocation2 + $0x50] sm:$0xff]  ;;  %p191_p6 = scmp.lt.s32.totalorder %s156_s11, %s156_s11 }
  0x14   :  { %120 = vst [vmem:[#allocation5 + $0x18] sm:$0xff] %v88_v17  ;;  %v61_v26 = vmul.f32 0.999, %v29_v19  ;;  %v62_v27 = vmul.f32 0.999, %v30_v20  ;;  %121 = vst [vmem:[#allocation5 + $0x20] sm:$0xff] %v89_v21 }
  0x15   :  { %v63_v28 = vmul.f32 0.999, %v31_v25  ;;  %122 = vst [vmem:[#allocation5 + $0x28] sm:$0xff] %v90_v22  ;;  %123 = vst [vmem:[#allocation5 + $0x30] sm:$0xff] %v91_v23  ;;  %v92_v29 = vsub.f32 1.0, %v60_v24  ;;  %v32_v30 = vld [vmem:[#allocation2 + $0x58] sm:$0xff] }
  0x16   :  { %v33_v31 = vld [vmem:[#allocation2 + $0x60] sm:$0xff]  ;;  %v34_v32 = vld [vmem:[#allocation2 + $0x68] sm:$0xff]  ;;  %v93_v33 = vsub.f32 1.0, %v61_v26  ;;  %v94_v34 = vsub.f32 1.0, %v62_v27  ;;  %v64_v36 = vmul.f32 0.999, %v32_v30 }
  0x17   :  { %v95_v35 = vsub.f32 1.0, %v63_v28  ;;  %v35_v37 = vld [vmem:[#allocation2 + $0x70] sm:$0xff]  ;;  %124 = vst [vmem:[#allocation5 + $0x38] sm:$0xff] %v92_v29  ;;  %v65_v38 = vmul.f32 0.999, %v33_v31  ;;  %v36_v42 = vld [vmem:[#allocation2 + $0x78] sm:$0xff] }
  0x18   :  { %v66_v39 = vmul.f32 0.999, %v34_v32  ;;  %v67_v40 = vmul.f32 0.999, %v35_v37  ;;  %125 = vst [vmem:[#allocation5 + $0x40] sm:$0xff] %v93_v33  ;;  %126 = vst [vmem:[#allocation5 + $0x48] sm:$0xff] %v94_v34 }
  0x19   :  { %127 = vst [vmem:[#allocation5 + $0x50] sm:$0xff] %v95_v35  ;;  %v96_v41 = vsub.f32 1.0, %v64_v36  ;;  %v37_v43 = vld [vmem:[#allocation2 + $0x80] sm:$0xff]  ;;  %v38_v44 = vld [vmem:[#allocation2 + $0x88] sm:$0xff]  ;;  %v97_v45 = vsub.f32 1.0, %v65_v38  ;;  %v39_v49 = vld [vmem:[#allocation2 + $0x90] sm:$0xff] }
  0x1a   :  { %v98_v46 = vsub.f32 1.0, %v66_v39  ;;  %v99_v47 = vsub.f32 1.0, %v67_v40  ;;  %v68_v48 = vmul.f32 0.999, %v36_v42  ;;  %v69_v50 = vmul.f32 0.999, %v37_v43 }
  0x1b   :  { %128 = vst [vmem:[#allocation5 + $0x58] sm:$0xff] %v96_v41  ;;  %v70_v51 = vmul.f32 0.999, %v38_v44  ;;  %v71_v52 = vmul.f32 0.999, %v39_v49  ;;  %129 = vst [vmem:[#allocation5 + $0x60] sm:$0xff] %v97_v45 }
  0x1c   :  { %130 = vst [vmem:[#allocation5 + $0x68] sm:$0xff] %v98_v46  ;;  %131 = vst [vmem:[#allocation5 + $0x70] sm:$0xff] %v99_v47  ;;  %v100_v53 = vsub.f32 1.0, %v68_v48  ;;  %v40_v54 = vld [vmem:[#allocation2 + $0x98] sm:$0xff]  ;;  %v41_v55 = vld [vmem:[#allocation2 + $0xa0] sm:$0xff]  ;;  %v101_v57 = vsub.f32 1.0, %v69_v50 }
  0x1d   :  { %v42_v56 = vld [vmem:[#allocation2 + $0xa8] sm:$0xff]  ;;  %v102_v58 = vsub.f32 1.0, %v70_v51  ;;  %v103_v59 = vsub.f32 1.0, %v71_v52  ;;  %v72_v60 = vmul.f32 0.999, %v40_v54  ;;  %v43_v61 = vld [vmem:[#allocation2 + $0xb0] sm:$0xff] }
  0x1e   :  { %132 = vst [vmem:[#allocation5 + $0x78] sm:$0xff] %v100_v53  ;;  %v73_v62 = vmul.f32 0.999, %v41_v55  ;;  %v74_v63 = vmul.f32 0.999, %v42_v56  ;;  %133 = vst [vmem:[#allocation5 + $0x80] sm:$0xff] %v101_v57 }
  0x1f   :  { %v75_v0 = vmul.f32 0.999, %v43_v61  ;;  %134 = vst [vmem:[#allocation5 + $0x88] sm:$0xff] %v102_v58  ;;  %135 = vst [vmem:[#allocation5 + $0x90] sm:$0xff] %v103_v59  ;;  %v104_v1 = vsub.f32 1.0, %v72_v60  ;;  %v44_v2 = vld [vmem:[#allocation2 + $0xb8] sm:$0xff] }
  0x20   :  { %v45_v3 = vld [vmem:[#allocation2 + $0xc0] sm:$0xff]  ;;  %v46_v4 = vld [vmem:[#allocation2 + $0xc8] sm:$0xff]  ;;  %v105_v5 = vsub.f32 1.0, %v73_v62  ;;  %v106_v6 = vsub.f32 1.0, %v74_v63  ;;  %v76_v8 = vmul.f32 0.999, %v44_v2 }
  0x21   :  { %v107_v7 = vsub.f32 1.0, %v75_v0  ;;  %v47_v9 = vld [vmem:[#allocation2 + $0xd0] sm:$0xff]  ;;  %136 = vst [vmem:[#allocation5 + $0x98] sm:$0xff] %v104_v1  ;;  %v77_v10 = vmul.f32 0.999, %v45_v3  ;;  %v48_v14 = vld [vmem:[#allocation2 + $0xd8] sm:$0xff] }
  0x22   :  { %v78_v11 = vmul.f32 0.999, %v46_v4  ;;  %v79_v12 = vmul.f32 0.999, %v47_v9  ;;  %137 = vst [vmem:[#allocation5 + $0xa0] sm:$0xff] %v105_v5  ;;  %138 = vst [vmem:[#allocation5 + $0xa8] sm:$0xff] %v106_v6 }
  0x23   :  { %139 = vst [vmem:[#allocation5 + $0xb0] sm:$0xff] %v107_v7  ;;  %v108_v13 = vsub.f32 1.0, %v76_v8  ;;  %v49_v15 = vld [vmem:[#allocation2 + $0xe0] sm:$0xff]  ;;  %v50_v16 = vld [vmem:[#allocation2 + $0xe8] sm:$0xff]  ;;  %v109_v17 = vsub.f32 1.0, %v77_v10  ;;  %v51_v21 = vld [vmem:[#allocation2 + $0xf0] sm:$0xff] }
  0x24   :  { %v110_v18 = vsub.f32 1.0, %v78_v11  ;;  %v111_v19 = vsub.f32 1.0, %v79_v12  ;;  %v80_v20 = vmul.f32 0.999, %v48_v14  ;;  %v81_v22 = vmul.f32 0.999, %v49_v15 }
  0x25   :  { %140 = vst [vmem:[#allocation5 + $0xb8] sm:$0xff] %v108_v13  ;;  %v82_v23 = vmul.f32 0.999, %v50_v16  ;;  %v83_v24 = vmul.f32 0.999, %v51_v21  ;;  %141 = vst [vmem:[#allocation5 + $0xc0] sm:$0xff] %v109_v17 }
  0x26   :  { %142 = vst [vmem:[#allocation5 + $0xc8] sm:$0xff] %v110_v18  ;;  %143 = vst [vmem:[#allocation5 + $0xd0] sm:$0xff] %v111_v19  ;;  %v112_v25 = vsub.f32 1.0, %v80_v20  ;;  %v52_v26 = vld [vmem:[#allocation2 + $0xf8] sm:$0xff]  ;;  %v113_v27 = vsub.f32 1.0, %v81_v22  ;;  %s186_s12 = scalar_lea.vmem %s156_s11, 4096 }
  0x27   :  { %v114_v28 = vsub.f32 1.0, %v82_v23  ;;  %v115_v29 = vsub.f32 1.0, %v83_v24  ;;  %v84_v30 = vmul.f32 0.999, %v52_v26  ;;  %p187_p5 = scmp.ne.s32.totalorder %s156_s11, %s186_s12  ;;  %p192_p7 = scmp.lt.s32.totalorder %s186_s12, %s186_s12 }
  0x28   :  { %144 = vst [vmem:[#allocation5 + $0xd8] sm:$0xff] %v112_v25  ;;  %145 = vst [vmem:[#allocation5 + $0xe0] sm:$0xff] %v113_v27 }
  0x29   :  { %146 = vst [vmem:[#allocation5 + $0xe8] sm:$0xff] %v114_v28  ;;  %147 = vst [vmem:[#allocation5 + $0xf0] sm:$0xff] %v115_v29  ;;  %v116_v31 = vsub.f32 1.0, %v84_v30  ;;  %p193_p8 = por %p192_p7, %p191_p6 }
  0x2b   :  { %148 = vst [vmem:[#allocation5 + $0xf8] sm:$0xff] %v116_v31  ;;  %p194_p9 = pnand %p193_p8, %p187_p5 }
  0x2d   :  { %197 = shalt.err (!%p194_p9)
}
  0x2e   :  { %158 = dma.vmem_to_hbm [thread:$0]  %s156_s11, 4096, %s229_s1, [#allocation4]  }
  0x2f   :  { %208 = dma.done.wait [#allocation4], 4096  }
  0x30   :  { %209 = vsyncadd [#allocation4], 4294963200 }
  0x31   :  { %162 = vsyncpa [#allocation3], 1 }
  0x32   :  { %163 = vsyncpa [#allocation4], 1 }

</bundles_post_ra>
